<compile_context>
chip_gen: v5e
topology: v5e:2x2
jax: 0.10.0
libtpu: 0.0.40
codegen_flags: <defaults>
</compile_context>

<pallas_src>
import functools

import jax
import jax.numpy as jnp
from jax import lax
from jax.experimental import pallas as pl
from jax.experimental.pallas import tpu as pltpu


def _round_up(x, m):
    return ((x + m - 1) // m) * m


# ---------------------------------------------------------------------------
# Pass 1: per-tile partial channel sums of relu(BN(conv1x1([sp; cp]))).
# ---------------------------------------------------------------------------
def _pool_kernel(sp_ref, cp_ref, wsp_ref, wcp_ref, scale_ref, shift_ref,
                 psum_ref, *, tile_hw, hw, masked):
    # In-kernel bf16 cast of the f32 input tiles (saves an HBM round trip that
    # a wrapper-side astype would cost).
    x_sp = sp_ref[0].astype(jnp.bfloat16)                 # (Csp, T)
    x_cp = cp_ref[0].astype(jnp.bfloat16)                 # (Ccp, T)

    # Split-weight matmuls (concat-free), f32 accumulate.
    y = jnp.dot(wsp_ref[...], x_sp, preferred_element_type=jnp.float32)
    y = y + jnp.dot(wcp_ref[...], x_cp, preferred_element_type=jnp.float32)

    # Folded BatchNorm (+conv bias) and ReLU, in f32.
    y = jnp.maximum(y * scale_ref[...] + shift_ref[...], 0.0)   # (Cout, T)

    if masked:  # only emitted when HW was zero-padded to a multiple of 128
        lane = lax.broadcasted_iota(jnp.int32, (1, tile_hw), 1)
        valid = (pl.program_id(1) * tile_hw + lane) < hw
        y = jnp.where(valid, y, 0.0)

    # Per-(batch, tile) partial channel sums; cross-tile reduce in the wrapper.
    psum_ref[0, 0] = jnp.sum(y, axis=-1, keepdims=True)          # (Cout, 1)


# ---------------------------------------------------------------------------
# Pass 2: recompute relu(BN(conv1x1)) and apply the attention gain.
# out = y + y*att == y * (1 + att)
# ---------------------------------------------------------------------------
def _apply_kernel(sp_ref, cp_ref, wsp_ref, wcp_ref, scale_ref, shift_ref,
                  gain_ref, o_ref):
    x_sp = sp_ref[0].astype(jnp.bfloat16)
    x_cp = cp_ref[0].astype(jnp.bfloat16)
    y = jnp.dot(wsp_ref[...], x_sp, preferred_element_type=jnp.float32)
    y = y + jnp.dot(wcp_ref[...], x_cp, preferred_element_type=jnp.float32)
    y = jnp.maximum(y * scale_ref[...] + shift_ref[...], 0.0)    # (Cout, T)
    o_ref[0] = (y * gain_ref[0]).astype(o_ref.dtype)             # lane-dense store


def feature_fusion_module(sp, cp, params, eps=1e-5,
                          vmem_budget_bytes=24 << 20, max_tile=4096):
    """sp, cp: NCHW float32. Returns NCHW float32 (matches torch FFM, eval)."""
    N, Csp, H, W = sp.shape
    _, Ccp, _, _ = cp.shape
    HW = H * W

    w1 = params["conv_w"]        # (Cout, Csp+Ccp, 1, 1)
    b1 = params["conv_b"]        # (Cout,)
    gamma = params["bn_gamma"]
    beta = params["bn_beta"]
    mean = params["bn_mean"]
    var = params["bn_var"]
    wa1 = params["att_w1"]       # (Chid, Cout, 1, 1)
    wa2 = params["att_w2"]       # (Cout, Chid, 1, 1)

    Cout = w1.shape[0]
    Chid = wa1.shape[0]

    # Fold BN (with conv bias) into per-channel scale/shift; split W1 by input.
    inv_std = 1.0 / jnp.sqrt(var + eps)
    scale = (gamma * inv_std)[:, None].astype(jnp.float32)           # (Cout, 1)
    shift = (beta - (mean - b1) * gamma * inv_std)[:, None].astype(jnp.float32)
    w1_2d = w1.reshape(Cout, Csp + Ccp)
    w_sp = w1_2d[:, :Csp].astype(jnp.bfloat16)                       # (Cout, Csp)
    w_cp = w1_2d[:, Csp:].astype(jnp.bfloat16)                       # (Cout, Ccp)

    # Pad output channels to a sublane multiple (padded channels get zero
    # scale/shift -> zero after ReLU -> zero pooled contribution).
    Cout_p = max(8, _round_up(Cout, 8))
    pad_c = Cout_p - Cout
    if pad_c:
        w_sp = jnp.pad(w_sp, ((0, pad_c), (0, 0)))
        w_cp = jnp.pad(w_cp, ((0, pad_c), (0, 0)))
        scale = jnp.pad(scale, ((0, pad_c), (0, 0)))
        shift = jnp.pad(shift, ((0, pad_c), (0, 0)))

    # NCHW -> (N, C, HW): pure reshape, no HBM transpose.  Inputs stay f32 in
    # HBM; the bf16 cast happens inside the kernels.
    sp_r = sp.reshape(N, Csp, HW).astype(jnp.float32)
    cp_r = cp.reshape(N, Ccp, HW).astype(jnp.float32)

    # ---- HW tile selection under an explicit VMEM budget -------------------
    # Per-step footprint: double-buffered f32 input tiles + output tile + weights.
    bytes_per_lane = 4 * 2 * (Csp + Ccp + Cout_p)
    fixed_bytes = Cout_p * (Csp + Ccp) * 2 + (8 << 10)
    if HW <= 128:
        T, HW_pad = HW, HW
    else:
        HW_pad = _round_up(HW, 128)
        T = 128
        t = 128
        while t <= min(HW_pad, max_tile):
            if HW_pad % t == 0 and t * bytes_per_lane + fixed_bytes <= vmem_budget_bytes:
                T = t
            t += 128
    masked = HW_pad != HW
    if masked:
        # TODO(synk): one extra HBM copy of the inputs; only taken when HW is
        # not a multiple of 128 (atypical for BiSeNet feature maps).
        sp_r = jnp.pad(sp_r, ((0, 0), (0, 0), (0, HW_pad - HW)))
        cp_r = jnp.pad(cp_r, ((0, 0), (0, 0), (0, HW_pad - HW)))
    n_t = HW_pad // T

    vmem_limit = int(min(64 << 20,
                         max(T * bytes_per_lane + fixed_bytes + (8 << 20),
                             32 << 20)))
    cparams = pltpu.CompilerParams(
        dimension_semantics=("parallel", "parallel"),
        vmem_limit_bytes=vmem_limit)

    # -------- Pass 1: per-tile partial channel sums (no y materialized) -----
    psum = pl.pallas_call(
        functools.partial(_pool_kernel, tile_hw=T, hw=HW, masked=masked),
        out_shape=jax.ShapeDtypeStruct((N, n_t, Cout_p, 1), jnp.float32),
        grid_spec=pltpu.PrefetchScalarGridSpec(
            num_scalar_prefetch=0,
            grid=(N, n_t),
            in_specs=[
                pl.BlockSpec((1, Csp, T), lambda n, t: (n, 0, t)),
                pl.BlockSpec((1, Ccp, T), lambda n, t: (n, 0, t)),
                # Weights / scale / shift: constant index_map -> stay resident.
                pl.BlockSpec((Cout_p, Csp), lambda n, t: (0, 0)),
                pl.BlockSpec((Cout_p, Ccp), lambda n, t: (0, 0)),
                pl.BlockSpec((Cout_p, 1), lambda n, t: (0, 0)),
                pl.BlockSpec((Cout_p, 1), lambda n, t: (0, 0)),
            ],
            out_specs=pl.BlockSpec((1, 1, Cout_p, 1), lambda n, t: (n, t, 0, 0)),
        ),
        compiler_params=cparams,
    )(sp_r, cp_r, w_sp, w_cp, scale, shift)

    # -------- Attention MLP on (N, Cout): tiny, plain JAX -------------------
    pooled = jnp.sum(psum[:, :, :Cout, 0], axis=1) * (1.0 / HW)      # (N, Cout)
    wa1_m = wa1.reshape(Chid, Cout)
    wa2_m = wa2.reshape(Cout, Chid)
    a = jnp.maximum(pooled @ wa1_m.T, 0.0)                           # (N, Chid)
    att = jax.nn.sigmoid(a @ wa2_m.T)                                # (N, Cout)
    gain = (1.0 + att).astype(jnp.float32)
    if pad_c:
        gain = jnp.pad(gain, ((0, 0), (0, pad_c)))
    gain = gain[:, :, None]                                          # (N, Cout_p, 1)

    # -------- Pass 2: recompute conv+BN+ReLU, apply gain, write output ------
    out = pl.pallas_call(
        _apply_kernel,
        out_shape=jax.ShapeDtypeStruct((N, Cout_p, HW_pad), jnp.float32),
        grid_spec=pltpu.PrefetchScalarGridSpec(
            num_scalar_prefetch=0,
            grid=(N, n_t),
            in_specs=[
                pl.BlockSpec((1, Csp, T), lambda n, t: (n, 0, t)),
                pl.BlockSpec((1, Ccp, T), lambda n, t: (n, 0, t)),
                pl.BlockSpec((Cout_p, Csp), lambda n, t: (0, 0)),
                pl.BlockSpec((Cout_p, Ccp), lambda n, t: (0, 0)),
                pl.BlockSpec((Cout_p, 1), lambda n, t: (0, 0)),
                pl.BlockSpec((Cout_p, 1), lambda n, t: (0, 0)),
                pl.BlockSpec((1, Cout_p, 1), lambda n, t: (n, 0, 0)),
            ],
            out_specs=pl.BlockSpec((1, Cout_p, T), lambda n, t: (n, 0, t)),
        ),
        compiler_params=cparams,
    )(sp_r, cp_r, w_sp, w_cp, scale, shift, gain)

    if pad_c or masked:
        out = out[:, :Cout, :HW]
    return out.reshape(N, Cout, H, W)


# ---------------------------------------------------------------------------
# Pure-JAX reference (f32) for a loose numerical sanity check.
# ---------------------------------------------------------------------------
def _reference_ffm(sp, cp, params, eps=1e-5):
    hi = jax.lax.Precision.HIGHEST
    x = jnp.concatenate([sp, cp], axis=1)                           # (N, Cin, H, W)
    Cin = x.shape[1]
    w1 = params["conv_w"].reshape(-1, Cin)                          # (Cout, Cin)
    Cout = w1.shape[0]
    y = (jnp.einsum("oc,nchw->nohw", w1, x, precision=hi)
         + params["conv_b"][None, :, None, None])
    inv_std = 1.0 / jnp.sqrt(params["bn_var"] + eps)
    y = ((y - params["bn_mean"][None, :, None, None])
         * (params["bn_gamma"] * inv_std)[None, :, None, None]
         + params["bn_beta"][None, :, None, None])
    y = jnp.maximum(y, 0.0)
    pooled = jnp.mean(y, axis=(2, 3))                               # (N, Cout)
    wa1 = params["att_w1"].reshape(-1, Cout)                        # (Chid, Cout)
    wa2 = params["att_w2"].reshape(Cout, -1)                        # (Cout, Chid)
    a = jnp.maximum(jnp.matmul(pooled, wa1.T, precision=hi), 0.0)
    att = jax.nn.sigmoid(jnp.matmul(a, wa2.T, precision=hi))
    return y + y * att[:, :, None, None]


def _init_params(key, in_channels, out_channels):
    hid = out_channels // 4
    ks = jax.random.split(key, 6)
    return {
        "conv_w": jax.random.normal(ks[0], (out_channels, in_channels, 1, 1),
                                    jnp.float32) * 0.1,
        "conv_b": jax.random.normal(ks[1], (out_channels,), jnp.float32) * 0.05,
        "bn_gamma": 1.0 + 0.1 * jax.random.normal(ks[2], (out_channels,), jnp.float32),
        "bn_beta": 0.05 * jax.random.normal(ks[3], (out_channels,), jnp.float32),
        "bn_mean": 0.02 * jnp.arange(out_channels, dtype=jnp.float32),
        "bn_var": 1.0 + 0.01 * jnp.arange(out_channels, dtype=jnp.float32),
        "att_w1": jax.random.normal(ks[4], (hid, out_channels, 1, 1),
                                    jnp.float32) * 0.1,
        "att_w2": jax.random.normal(ks[5], (out_channels, hid, 1, 1),
                                    jnp.float32) * 0.1,
    }


if __name__ == "__main__":
    key = jax.random.PRNGKey(0)
    k_sp, k_cp, k_p = jax.random.split(key, 3)

    N, Csp, Ccp, H, W = 2, 4, 4, 16, 16
    in_channels = Csp + Ccp      # 8
    out_channels = 8             # attention hidden = 2

    sp = jax.random.normal(k_sp, (N, Csp, H, W), jnp.float32)
    cp = jax.random.normal(k_cp, (N, Ccp, H, W), jnp.float32)
    params = _init_params(k_p, in_channels, out_channels)

    out = feature_fusion_module(sp, cp, params)
    jax.block_until_ready(out)
    assert out.shape == (N, out_channels, H, W)

    # Loose tolerance: the main matmul runs in bf16 (f32 accumulate).
    ref = _reference_ffm(sp, cp, params)
    max_err = float(jnp.max(jnp.abs(out - ref)))
    assert max_err < 5e-2, f"max abs error too large: {max_err}"

    print("KERNEL_OK")
</pallas_src>

<mosaic_0001>
module attributes {stable_mosaic.version = 11 : i64} {
  func.func @_pool_kernel(%arg0: i32, %arg1: i32, %arg2: memref<1x4x256xf32, #tpu.memory_space<vmem>>, %arg3: memref<1x4x256xf32, #tpu.memory_space<vmem>>, %arg4: memref<8x4xbf16, #tpu.memory_space<vmem>>, %arg5: memref<8x4xbf16, #tpu.memory_space<vmem>>, %arg6: memref<8x1xf32, #tpu.memory_space<vmem>>, %arg7: memref<8x1xf32, #tpu.memory_space<vmem>>, %arg8: memref<1x1x8x1xf32, #tpu.memory_space<vmem>>) attributes {dimension_semantics = [#tpu.dimension_semantics<parallel>, #tpu.dimension_semantics<parallel>], iteration_bounds = array<i64: 2, 1>, scalar_prefetch = 0 : i64, scratch_operands = 0 : i64, tpu.core_type = #tpu.core_type<tc>, window_params = [{transform_indices = @transform_0, window_bounds = array<i64: 1, 4, 256>}, {transform_indices = @transform_1, window_bounds = array<i64: 1, 4, 256>}, {pipeline_mode = #tpu.pipeline_mode<synchronous>, transform_indices = @transform_2, window_bounds = array<i64: 8, 4>}, {pipeline_mode = #tpu.pipeline_mode<synchronous>, transform_indices = @transform_3, window_bounds = array<i64: 8, 4>}, {pipeline_mode = #tpu.pipeline_mode<synchronous>, transform_indices = @transform_4, window_bounds = array<i64: 8, 1>}, {pipeline_mode = #tpu.pipeline_mode<synchronous>, transform_indices = @transform_5, window_bounds = array<i64: 8, 1>}, {transform_indices = @transform_6, window_bounds = array<i64: 1, 1, 8, 1>}]} {
    %c0 = arith.constant 0 : index
    %c0_0 = arith.constant 0 : index
    %c0_1 = arith.constant 0 : index
    %0 = vector.load %arg2[%c0, %c0_0, %c0_1] : memref<1x4x256xf32, #tpu.memory_space<vmem>>, vector<1x4x256xf32>
    %1 = vector.shape_cast %0 : vector<1x4x256xf32> to vector<4x256xf32>
    %2 = arith.truncf %1 : vector<4x256xf32> to vector<4x256xbf16>
    %c0_2 = arith.constant 0 : index
    %c0_3 = arith.constant 0 : index
    %c0_4 = arith.constant 0 : index
    %3 = vector.load %arg3[%c0_2, %c0_3, %c0_4] : memref<1x4x256xf32, #tpu.memory_space<vmem>>, vector<1x4x256xf32>
    %4 = vector.shape_cast %3 : vector<1x4x256xf32> to vector<4x256xf32>
    %5 = arith.truncf %4 : vector<4x256xf32> to vector<4x256xbf16>
    %c0_5 = arith.constant 0 : index
    %c0_6 = arith.constant 0 : index
    %6 = vector.load %arg4[%c0_5, %c0_6] : memref<8x4xbf16, #tpu.memory_space<vmem>>, vector<8x4xbf16>
    %cst = arith.constant dense<0.000000e+00> : vector<8x256xf32>
    %7 = tpu.matmul %6, %2, %cst {dimension_numbers = #tpu.dot_dimension_numbers<[1], [0], [0], [1], [0, 0, 1, 1], [], []>} : vector<8x4xbf16>, vector<4x256xbf16>, vector<8x256xf32> -> vector<8x256xf32>
    %c0_7 = arith.constant 0 : index
    %c0_8 = arith.constant 0 : index
    %8 = vector.load %arg5[%c0_7, %c0_8] : memref<8x4xbf16, #tpu.memory_space<vmem>>, vector<8x4xbf16>
    %cst_9 = arith.constant dense<0.000000e+00> : vector<8x256xf32>
    %9 = tpu.matmul %8, %5, %cst_9 {dimension_numbers = #tpu.dot_dimension_numbers<[1], [0], [0], [1], [0, 0, 1, 1], [], []>} : vector<8x4xbf16>, vector<4x256xbf16>, vector<8x256xf32> -> vector<8x256xf32>
    %10 = arith.addf %7, %9 : vector<8x256xf32>
    %c0_10 = arith.constant 0 : index
    %c0_11 = arith.constant 0 : index
    %11 = vector.load %arg6[%c0_10, %c0_11] : memref<8x1xf32, #tpu.memory_space<vmem>>, vector<8x1xf32>
    %12 = vector.broadcast %11 : vector<8x1xf32> to vector<8x256xf32>
    %13 = arith.mulf %10, %12 : vector<8x256xf32>
    %c0_12 = arith.constant 0 : index
    %c0_13 = arith.constant 0 : index
    %14 = vector.load %arg7[%c0_12, %c0_13] : memref<8x1xf32, #tpu.memory_space<vmem>>, vector<8x1xf32>
    %15 = vector.broadcast %14 : vector<8x1xf32> to vector<8x256xf32>
    %16 = arith.addf %13, %15 : vector<8x256xf32>
    %cst_14 = arith.constant 0.000000e+00 : f32
    %17 = vector.broadcast %cst_14 : f32 to vector<8x256xf32>
    %18 = arith.maximumf %16, %17 : vector<8x256xf32>
    %cst_15 = arith.constant dense<0.000000e+00> : vector<8xf32>
    %19 = vector.multi_reduction <add>, %18, %cst_15 [1] : vector<8x256xf32> to vector<8xf32>
    %20 = vector.shape_cast %19 : vector<8xf32> to vector<8x1xf32>
    %c0_16 = arith.constant 0 : index
    %c0_17 = arith.constant 0 : index
    %c0_18 = arith.constant 0 : index
    %c0_19 = arith.constant 0 : index
    %21 = vector.load %arg8[%c0_16, %c0_17, %c0_18, %c0_19] : memref<1x1x8x1xf32, #tpu.memory_space<vmem>>, vector<1x1x8x1xf32>
    %22 = vector.shape_cast %21 : vector<1x1x8x1xf32> to vector<8x1xf32>
    %23 = vector.shape_cast %20 : vector<8x1xf32> to vector<1x1x8x1xf32>
    tpu.vector_store %arg8[%c0_16, %c0_17, %c0_18, %c0_19], %23 {strides = array<i32>} : memref<1x1x8x1xf32, #tpu.memory_space<vmem>>, vector<1x1x8x1xf32>,
    return
  }
  func.func @transform_0(%arg0: i32, %arg1: i32) -> (i32, i32, i32) {
    %c0_i32 = arith.constant 0 : i32
    %c0_i32_0 = arith.constant 0 : i32
    return %arg0, %c0_i32, %arg1 : i32, i32, i32
  }
  func.func @transform_1(%arg0: i32, %arg1: i32) -> (i32, i32, i32) {
    %c0_i32 = arith.constant 0 : i32
    %c0_i32_0 = arith.constant 0 : i32
    return %arg0, %c0_i32, %arg1 : i32, i32, i32
  }
  func.func @transform_2(%arg0: i32, %arg1: i32) -> (i32, i32) {
    %c0_i32 = arith.constant 0 : i32
    %c0_i32_0 = arith.constant 0 : i32
    %c0_i32_1 = arith.constant 0 : i32
    return %c0_i32, %c0_i32_0 : i32, i32
  }
  func.func @transform_3(%arg0: i32, %arg1: i32) -> (i32, i32) {
    %c0_i32 = arith.constant 0 : i32
    %c0_i32_0 = arith.constant 0 : i32
    %c0_i32_1 = arith.constant 0 : i32
    return %c0_i32, %c0_i32_0 : i32, i32
  }
  func.func @transform_4(%arg0: i32, %arg1: i32) -> (i32, i32) {
    %c0_i32 = arith.constant 0 : i32
    %c0_i32_0 = arith.constant 0 : i32
    %c0_i32_1 = arith.constant 0 : i32
    return %c0_i32, %c0_i32_0 : i32, i32
  }
  func.func @transform_5(%arg0: i32, %arg1: i32) -> (i32, i32) {
    %c0_i32 = arith.constant 0 : i32
    %c0_i32_0 = arith.constant 0 : i32
    %c0_i32_1 = arith.constant 0 : i32
    return %c0_i32, %c0_i32_0 : i32, i32
  }
  func.func @transform_6(%arg0: i32, %arg1: i32) -> (i32, i32, i32, i32) {
    %c0_i32 = arith.constant 0 : i32
    %c0_i32_0 = arith.constant 0 : i32
    %c0_i32_1 = arith.constant 0 : i32
    return %arg0, %arg1, %c0_i32, %c0_i32_0 : i32, i32, i32, i32
  }
}

</mosaic_0001>

<bundles_post_ra>
// kernel: tpu_custom_call.1
= control target key start
LH: loop header
LB: loop body
LE: loop exit
PB: predicated region body
PF: predicated region fallthrough
CT: control target
= control target key end

     0   :  { %11 = vsyncpa [#allocation3], 0  ;;  %s860_s0 = inlined_call_operand.vmem [shape: f32[2,4,256], index: 0, kind: input, shape index: {}]   ;;  %s861_s1 = inlined_call_operand.hbm [shape: f32[2,4,256], index: 1, kind: input, shape index: {}]   ;;  %s862_s2 = inlined_call_operand.vmem [shape: bf16[8,4], index: 2, kind: input, shape index: {}]   ;;  %s863_s3 = inlined_call_operand.vmem [shape: bf16[8,4], index: 3, kind: input, shape index: {}]   ;;  %s864_s4 = inlined_call_operand.vmem [shape: f32[8,1], index: 4, kind: input, shape index: {}]   ;;  %s865_s5 = inlined_call_operand.vmem [shape: f32[8,1], index: 5, kind: input, shape index: {}]   ;;  %s866_s6 = inlined_call_operand.vmem [shape: f32[2,1,8,1], index: 6, kind: output, shape index: {}]  }
   0x1   :  { %13 = vsyncpa [#allocation3 + $0x1], 0  ;;  %s746_s21 = smov 0   ;;  %s748_s22 = smov 0  }
   0x2   :  { %s750_s23 = smov 0   ;;  %s752_s24 = smov 0  }
   0x3   :  { %s754_s25 = smov 0   ;;  %s756_s26 = smov 0  }
   0x4 LB: > { %s551_s27 = sadd.s32 4294967295, %s708_s26   ;;  %s31_s28 = sadd.s32 1, %s704_s25  ;;  %s708_s26 = sphi %s756_s26, %s19_s26   ;;  %s704_s25 = sphi %s754_s25, %s873_s25   ;;  %s700_s24 = sphi %s752_s24, %s872_s24   ;;  %s696_s23 = sphi %s750_s23, %s871_s23   ;;  %s692_s22 = sphi %s748_s22, %s870_s22   ;;  %s688_s21 = sphi %s746_s21, %s869_s21  }
   0x5   : > { %p33_p0 = scmp.ge.s32.totalorder %s31_s28, 2  ;;  %s68_s29 = sadd.s32 1, %s696_s23 }
   0x6   : > { %p75_p1 = scmp.ne.s32.totalorder %s696_s23, %s692_s22  ;;  %p76_p2 = scmp.eq.s32.totalorder %s708_s26, 0 }
   0x7   : > { %s875_s28 = smov (%p33_p0, %s31_s28), 0  ;;  %p81_p4 = scmp.ne.s32.totalorder %s692_s22, %s688_s21 }
   0x8   : > { %p782_p3 = por %p76_p2, %p75_p1  ;;  %s63_s7 = ssub.s32 %s704_s25, %s875_s28 }
   0x9   : > { %p82_p5 = scmp.eq.s32.totalorder %s551_s27, 0  ;;  %p66_p6 = scmp.eq.s32.totalorder %s63_s7, 0 }
   0xa   : > { %p577_p8 = scmp.lt.s32.totalorder %s708_s26, 2  ;;  %s242_s10 = sand.u32 1, %s696_s23  }
   0xb   : > { %p789_p7 = por %p82_p5, %p81_p4  ;;  %s569_s11 = sshll.u32 %s704_s25, 3 }
   0xc   : > { %s795_s9 = scalar_select %p66_p6, %s696_s23, %s68_s29  }
   0xd   : > { %s555_s12 = sshll.u32 %s242_s10, 3  ;;  %s253_s15 = scalar_lea.hbm %s861_s1, %s569_s11 }
   0xe   : > { %s255_s16 = sshll.u32 %s253_s15, 4  ;;  %s246_s17 = scalar_lea.vmem [#allocation2], %s555_s12  ;;  %s256_s16 = int_to_ptr.hbm [resolvable:$true] %s255_s16 }
   0xf   : > { %s257_s18 = sshll.u32 %s246_s17, 4  ;;  %p574_p9 = pnand %p577_p8, %p782_p3  ;;  %s258_s18 = int_to_ptr.vmem [resolvable:$true] %s257_s18 }
  0x10   : > { %p558_p10 = scmp.ge.s32.totalorder %s708_s26, 1  ;;  %p262_p11 = scmp.lt.s32.totalorder %s708_s26, 3 }
  0x11   : > { %s243_s19 = scalar_lea.sflag [#allocation3], %s242_s10 }
  0x12   : > { %576 = dma.hbm_to_vmem [thread:$0]  (!%p574_p9), %s256_s16, 128, %s258_s18, %s243_s19  }
  0x13   : > { %p263_p12 = pnand %p558_p10, %p262_p11 }
  0x14   : > { %s268_s20 = sand.u32 (!%p263_p12), 1, %s692_s22  }
  0x15   : > { %266 = sbr.rel (%p263_p12) target bundleno = 308 (0x134), region = 44  ;;  %s559_s21 = sshll.u32 (!%p263_p12), %s268_s20, 3 }
  0x16   : > { %s269_s27 = scalar_lea.sflag (!%p263_p12), [#allocation3], %s268_s20  ;;  %s272_s29 = scalar_lea.vmem (!%p263_p12), [#allocation2], %s559_s21 }
  0x1a   : > { %683 = dma.done.wait (%p789_p7), %s269_s27, 128  }
  0x1b   : > { %685 = vsyncadd (%p789_p7), %s269_s27, 4294967168  ;;  %p314_p13 = scmp.lt.s32.totalorder %s700_s24, 1  ;;  %v710_v0 = vmov 0   ;;  %v424_v2 = vld [vmem:[%s864_s4] sm:$0xff]  ;;  %v341_v3 = vld [vmem:[%s272_s29] sm:$0xff]  ;;  %vm356_vm0 = vcmask 1041408  }
  0x1c   : > { %627 = vset.pattern.permute.xlu0 %v710_v0  ;;  %v432_v4 = vld [vmem:[%s865_s5] sm:$0xff]  ;;  %vm352_vm1 = vcmask 31744   ;;  %vm445_vm2 = vcmask 7168  }
  0x1d   : > { %s877_s24 = smov (!%p314_p13, %s700_s24), 1  ;;  %427 = vperm.xlu0 %627, %v424_v2   ;;  %v350_v11 = vld [vmem:[%s862_s2] sm:$0xf] }
  0x1e   : > { %s570_s30 = sshll.u32 %s877_s24, 3  ;;  %v351_v18 = vld [vmem:[%s863_s3] sm:$0xf] }
  0x1f   : > { %s321_s11 = scalar_lea.vmem %s860_s0, %s570_s30  ;;  %s330_s21 = scalar_lea.vmem %s866_s6, %s570_s30 }
  0x20   : > { %v332_v1 = vld [vmem:[%s321_s11] sm:$0xff] }
  0x21   : > { %334 = vst [vmem:[#allocation1] ss:$2 sm:$0xff] %v332_v1 }
  0x25   : > { %435 = vperm.xlu0 %627, %v432_v4  }
  0x28   : > { %v335_v5 = vld.sshfl [vmem:[#allocation1] sm:$0xff pattern:$0x75316420]  ;;  %v336_v6 = vld.sshfl [vmem:[#allocation1 + $0x8] sm:$0xff pattern:$0x75316420] }
  0x29   : > { %v339_v7 = vpack.c.bf16 %v335_v5, %v335_v5  ;;  %v340_v8 = vpack.c.bf16 %v336_v6, %v336_v6  ;;  %343 = vst [vmem:[#allocation1] ss:$2 sm:$0xff] %v341_v3 }
  0x2b   : > { %v393_v9 = vsel %vm356_vm0, %v339_v7, 0  ;;  %v396_v10 = vsel %vm356_vm0, %v340_v8, 0 }
  0x2c   : > { %405 = vmatpush.bf16.msra.mxu2 %v393_v9  ;;  %418 = vmatpush.bf16.msra.mxu3 %v396_v10 }
  0x2f   : > { %565 = vmatmul.msk.bf16.vlgmr.msra.gmra.mxu2 %vm352_vm1, %v350_v11  ;;  %566 = vmatmul.msk.bf16.vlgmr.msra.gmra.mxu3 %vm352_vm1, %v350_v11 }
  0x30   : > { %v344_v12 = vld.sshfl [vmem:[#allocation1] sm:$0xff pattern:$0x75316420]  ;;  %v345_v13 = vld.sshfl [vmem:[#allocation1 + $0x8] sm:$0xff pattern:$0x75316420] }
  0x31   : > { %v348_v14 = vpack.c.bf16 %v344_v12, %v344_v12  ;;  %v349_v15 = vpack.c.bf16 %v345_v13, %v345_v13 }
  0x33   : > { %v358_v16 = vsel %vm356_vm0, %v348_v14, 0  ;;  %v361_v17 = vsel %vm356_vm0, %v349_v15, 0 }
  0x34   : > { %370 = vmatpush.bf16.msra.mxu0 %v358_v16  ;;  %383 = vmatpush.bf16.msra.mxu1 %v361_v17 }
  0x37   : > { %563 = vmatmul.msk.bf16.vlgmr.msra.gmra.mxu0 %vm352_vm1, %v351_v18  ;;  %564 = vmatmul.msk.bf16.vlgmr.msra.gmra.mxu1 %vm352_vm1, %v351_v18 }
  0x8f   : > { %v428_v19 = vpop.permute.xlu0 %427 }
  0x97   : > { %v436_v28 = vpop.permute.xlu0 %435 }
  0xb2   : > { %v407_v20 = vpop.f32.mrf.mxu2  ;;  %v420_v21 = vpop.f32.mrf.mxu3 }
  0xb4   : > { %v372_v22 = vpop.f32.mrf.mxu0  ;;  %v385_v23 = vpop.f32.mrf.mxu1 }
  0xb5   : > { %v408_v24 = vadd.f32 %v407_v20, %v372_v22  ;;  %v421_v25 = vadd.f32 %v420_v21, %v385_v23 }
  0xb7   : > { %v430_v26 = vmul.f32 %v428_v19, %v408_v24  ;;  %v431_v27 = vmul.f32 %v428_v19, %v421_v25 }
  0xb9   : > { %v438_v29 = vadd.f32 %v436_v28, %v430_v26  ;;  %v439_v30 = vadd.f32 %v436_v28, %v431_v27 }
  0xba   : > { %v409_v31 = vpop.f32.mrf.mxu2  ;;  %v422_v32 = vpop.f32.mrf.mxu3 }
  0xbb   : > { %v440_v33 = vmax.f32 %v438_v29, 0.0  ;;  %v441_v34 = vmax.f32 %v439_v30, 0.0 }
  0xbc   : > { %v374_v35 = vpop.f32.mrf.mxu0  ;;  %v387_v36 = vpop.f32.mrf.mxu1 }
  0xbd   : > { %v442_v37 = vadd.f32 %v441_v34, %v440_v33 }
  0xbf   : > { %443 = vadd.xlane.f32.xlu1 %v442_v37 }
 0x132   : > { %v444_v38 = vpop.xlane.xlu1 %443 }
 0x133   : > { %446 = vst.msk [vmem:[%s330_s21] sm:$0xff] %vm445_vm2, %v444_v38 }
 0x134 PF: > { %s19_s26 = sadd.s32 1, %s708_s26   ;;  %s869_s21 = smov %s692_s22 }
 0x135   : > { %p16_p0 = scmp.ge.s32.totalorder %s19_s26, 4   ;;  %s870_s22 = smov %s696_s23 }
 0x136   : > { %s871_s23 = smov %s795_s9  ;;  %s872_s24 = smov %s704_s25 }
 0x137   : > { %s873_s25 = smov %s875_s28  ;;  %18 = sbr.rel (!%p16_p0) target bundleno = 4 (0x4), region = 87 }
 0x13c   :  { %472 = vsyncpa [#allocation3], 1 }
 0x13d   :  { %474 = vsyncpa [#allocation3 + $0x1], 1 }

</bundles_post_ra>
